<compile_context>
chip_gen: v5e
topology: v5e:2x2
jax: 0.10.0
libtpu: 0.0.40
codegen_flags: <defaults>
</compile_context>

<pallas_src>
import functools

import jax
import jax.numpy as jnp
from jax.experimental import pallas as pl
from jax.experimental.pallas import tpu as pltpu

DEFAULT_EPS = 1e-5

# Resident-VMEM target used for row-tile sizing (2x in + 2x out double-buffered
# blocks + ~3 f32 temporaries), and the explicit scoped-VMEM limit handed to
# Mosaic.  48 MiB is below v7x's 64 MiB physical VMEM and well below
# v5e/v6e's 128 MiB, but above the 16/32 MiB scoped defaults.
_VMEM_SIZING_BUDGET = 28 << 20
_VMEM_LIMIT_BYTES = 48 << 20


# -----------------------------------------------------------------------------
# Kernels
# -----------------------------------------------------------------------------
def _centered_stats(x, eps):
    """x: (TR, T) float32.  Returns (x - mean, mean, var + eps), stats (TR, 1).

    Two-pass variance (numerically safe, always >= 0).  Unbiased (divide by
    T - 1), matching torch.Tensor.var's default; T == 1 yields NaN at runtime,
    same as PyTorch -- callers must use T > 1.
    """
    t = x.shape[-1]
    mean = jnp.sum(x, axis=-1, keepdims=True) * (1.0 / t)        # (TR, 1)
    d = x - mean
    var = jnp.sum(d * d, axis=-1, keepdims=True) / jnp.float32(t - 1)
    return d, mean, var + jnp.float32(eps)


def _instance_norm_kernel(x_ref, o_ref, *, eps):
    # x_ref block: (TR, T)
    x = x_ref[...].astype(jnp.float32)
    d, _, var_eps = _centered_stats(x, eps)
    o_ref[...] = (d * jax.lax.rsqrt(var_eps)).astype(o_ref.dtype)


def _instance_norm_stats_kernel(x_ref, o_ref, mean_ref, std_ref, *, eps):
    # x_ref block: (TR, T); mean_ref/std_ref blocks: (TR, 1)
    x = x_ref[...].astype(jnp.float32)
    d, mean, var_eps = _centered_stats(x, eps)
    o_ref[...] = (d * jax.lax.rsqrt(var_eps)).astype(o_ref.dtype)
    mean_ref[...] = mean.astype(mean_ref.dtype)
    std_ref[...] = jnp.sqrt(var_eps).astype(std_ref.dtype)


# -----------------------------------------------------------------------------
# Tiling helpers
# -----------------------------------------------------------------------------
def _sublane_quantum(itemsize):
    # f32 -> 8, bf16/f16 -> 16, int8/fp8 -> 32 rows per sublane tile.
    return {4: 8, 2: 16, 1: 32}.get(int(itemsize), 8)


def _choose_block_rows(num_rows, T, itemsize, *, min_steps=4):
    """Pick a row tile for the flattened (B*C, T) array.

    Targets ~2-8 MiB of input data per step while keeping the estimated
    resident VMEM (double-buffered in/out blocks + f32 temps) under the
    sizing budget; prefers at least `min_steps` grid steps when the problem
    is big enough that pipelining / v7x megacore sharding matters.
    """
    sub = _sublane_quantum(itemsize)
    bytes_per_tile_elem = 4 * itemsize + 12     # 2x in + 2x out + ~3 f32 temps
    max_tr = (_VMEM_SIZING_BUDGET // bytes_per_tile_elem) // max(T, 1)
    max_tr = max(sub, (max_tr // sub) * sub)

    if num_rows <= max_tr:
        # Whole array fits in one tile.  Still split for pipeline depth /
        # the second TensorCore on v7x when the row count and size allow it.
        if (num_rows >= 2 * min_steps * sub
                and num_rows * T * itemsize >= (2 << 20)):
            tr = -(-num_rows // min_steps)                       # cdiv
            tr = ((tr + sub - 1) // sub) * sub
            return min(tr, max_tr)
        return num_rows                                          # full extent
    return max_tr


# -----------------------------------------------------------------------------
# Wrapper
# -----------------------------------------------------------------------------
def instance_norm(x, return_stats=False, eps=DEFAULT_EPS, block_rows=None):
    """x: (B, C, T).  Normalizes over the last axis per (b, c).

    Returns y, or (y, mean, std) with mean/std of shape (B, C, 1) (float32),
    matching the PyTorch module's return convention.
    """
    B, C, T = x.shape
    rows = B * C
    itemsize = jnp.dtype(x.dtype).itemsize
    sub = _sublane_quantum(itemsize)

    if block_rows is None:
        tr = _choose_block_rows(rows, T, itemsize)
    else:
        tr = int(block_rows)
        assert tr == rows or tr % sub == 0, (
            f"block_rows must equal B*C ({rows}) or be a multiple of the "
            f"sublane quantum ({sub}) for dtype {x.dtype}")
    tr = min(tr, rows)

    x2 = x.reshape(rows, T)                    # free, contiguous reshape
    grid = (pl.cdiv(rows, tr),)
    data_spec = pl.BlockSpec((tr, T), lambda r: (r, 0))
    compiler_params = pltpu.CompilerParams(
        dimension_semantics=("parallel",),
        vmem_limit_bytes=_VMEM_LIMIT_BYTES,
    )

    if not return_stats:
        # Common path: single lane-dense output, no stats DMA per step.
        y2 = pl.pallas_call(
            functools.partial(_instance_norm_kernel, eps=eps),
            out_shape=jax.ShapeDtypeStruct((rows, T), x.dtype),
            grid_spec=pltpu.PrefetchScalarGridSpec(
                num_scalar_prefetch=0,
                grid=grid,
                in_specs=[data_spec],
                out_specs=data_spec,
            ),
            compiler_params=compiler_params,
        )(x2)
        return y2.reshape(B, C, T)

    stat_spec = pl.BlockSpec((tr, 1), lambda r: (r, 0))
    y2, mean2, std2 = pl.pallas_call(
        functools.partial(_instance_norm_stats_kernel, eps=eps),
        out_shape=(
            jax.ShapeDtypeStruct((rows, T), x.dtype),
            jax.ShapeDtypeStruct((rows, 1), jnp.float32),
            jax.ShapeDtypeStruct((rows, 1), jnp.float32),
        ),
        grid_spec=pltpu.PrefetchScalarGridSpec(
            num_scalar_prefetch=0,
            grid=grid,
            in_specs=[data_spec],
            out_specs=(data_spec, stat_spec, stat_spec),
        ),
        compiler_params=compiler_params,
    )(x2)
    return (y2.reshape(B, C, T),
            mean2.reshape(B, C, 1),
            std2.reshape(B, C, 1))


# -----------------------------------------------------------------------------
# Reference + test
# -----------------------------------------------------------------------------
def _reference(x, eps=DEFAULT_EPS):
    xf = x.astype(jnp.float32)
    mean = jnp.mean(xf, axis=-1, keepdims=True)
    var = jnp.var(xf, axis=-1, keepdims=True, ddof=1)   # unbiased, like torch
    std = jnp.sqrt(var + eps)
    return (xf - mean) / std, mean, std


if __name__ == "__main__":
    key = jax.random.PRNGKey(0)
    k0, k1, k2, k3 = jax.random.split(key, 4)

    # (a) Small shape consistent with the module's conv1d-style usage: (B,C,T).
    B, C, T = 2, 4, 16
    x = jax.random.normal(k0, (B, C, T), dtype=jnp.float32)

    y, mean, std = instance_norm(x, return_stats=True)
    jax.block_until_ready((y, mean, std))
    y_ref, mean_ref, std_ref = _reference(x)
    assert jnp.allclose(y, y_ref, atol=1e-4, rtol=1e-4)
    assert jnp.allclose(mean, mean_ref, atol=1e-5, rtol=1e-5)
    assert jnp.allclose(std, std_ref, atol=1e-5, rtol=1e-5)

    y_only = instance_norm(x)
    jax.block_until_ready(y_only)
    assert jnp.allclose(y_only, y_ref, atol=1e-4, rtol=1e-4)

    # (b) Row-tiled path (multiple grid steps) with a forced block size.
    B2, C2, T2 = 2, 16, 128
    x2 = jax.random.normal(k1, (B2, C2, T2), dtype=jnp.float32)
    y2, mean2, std2 = instance_norm(x2, return_stats=True, block_rows=8)
    jax.block_until_ready((y2, mean2, std2))
    y2_ref, mean2_ref, std2_ref = _reference(x2)
    assert jnp.allclose(y2, y2_ref, atol=1e-4, rtol=1e-4)
    assert jnp.allclose(mean2, mean2_ref, atol=1e-5, rtol=1e-5)
    assert jnp.allclose(std2, std2_ref, atol=1e-5, rtol=1e-5)

    # (c) bf16 input (dtype-aware sublane quantum = 16 rows), tiled.
    B3, C3, T3 = 2, 16, 128
    x3 = jax.random.normal(k2, (B3, C3, T3), dtype=jnp.float32).astype(jnp.bfloat16)
    y3 = instance_norm(x3, block_rows=16)
    jax.block_until_ready(y3)
    y3_ref, _, _ = _reference(x3)
    assert jnp.allclose(y3.astype(jnp.float32), y3_ref, atol=3e-2, rtol=3e-2)

    # (d) Partial last row-block (B*C not a multiple of block_rows).
    B4, C4, T4 = 3, 5, 64
    x4 = jax.random.normal(k3, (B4, C4, T4), dtype=jnp.float32)
    y4, mean4, std4 = instance_norm(x4, return_stats=True, block_rows=8)
    jax.block_until_ready((y4, mean4, std4))
    y4_ref, mean4_ref, std4_ref = _reference(x4)
    assert jnp.allclose(y4, y4_ref, atol=1e-4, rtol=1e-4)
    assert jnp.allclose(mean4, mean4_ref, atol=1e-5, rtol=1e-5)
    assert jnp.allclose(std4, std4_ref, atol=1e-5, rtol=1e-5)

    print("KERNEL_OK")
</pallas_src>

<mosaic_0001>
module attributes {stable_mosaic.version = 11 : i64} {
  func.func @_instance_norm_stats_kernel(%arg0: i32, %arg1: memref<8x16xf32, #tpu.memory_space<vmem>>, %arg2: memref<8x16xf32, #tpu.memory_space<vmem>>, %arg3: memref<8x1xf32, #tpu.memory_space<vmem>>, %arg4: memref<8x1xf32, #tpu.memory_space<vmem>>) attributes {dimension_semantics = [#tpu.dimension_semantics<parallel>], iteration_bounds = array<i64: 1>, scalar_prefetch = 0 : i64, scratch_operands = 0 : i64, tpu.core_type = #tpu.core_type<tc>, window_params = [{transform_indices = @transform_0, window_bounds = array<i64: 8, 16>}, {transform_indices = @transform_1, window_bounds = array<i64: 8, 16>}, {transform_indices = @transform_2, window_bounds = array<i64: 8, 1>}, {transform_indices = @transform_3, window_bounds = array<i64: 8, 1>}]} {
    %c0 = arith.constant 0 : index
    %c0_0 = arith.constant 0 : index
    %0 = vector.load %arg1[%c0, %c0_0] : memref<8x16xf32, #tpu.memory_space<vmem>>, vector<8x16xf32>
    %cst = arith.constant dense<0.000000e+00> : vector<8xf32>
    %1 = vector.multi_reduction <add>, %0, %cst [1] : vector<8x16xf32> to vector<8xf32>
    %2 = vector.shape_cast %1 : vector<8xf32> to vector<8x1xf32>
    %cst_1 = arith.constant 6.250000e-02 : f32
    %3 = vector.broadcast %cst_1 : f32 to vector<8x1xf32>
    %4 = arith.mulf %2, %3 : vector<8x1xf32>
    %5 = vector.broadcast %4 : vector<8x1xf32> to vector<8x16xf32>
    %6 = arith.subf %0, %5 : vector<8x16xf32>
    %7 = arith.mulf %6, %6 : vector<8x16xf32>
    %cst_2 = arith.constant dense<0.000000e+00> : vector<8xf32>
    %8 = vector.multi_reduction <add>, %7, %cst_2 [1] : vector<8x16xf32> to vector<8xf32>
    %9 = vector.shape_cast %8 : vector<8xf32> to vector<8x1xf32>
    %cst_3 = arith.constant 1.500000e+01 : f32
    %10 = vector.broadcast %cst_3 : f32 to vector<8x1xf32>
    %11 = arith.divf %9, %10 : vector<8x1xf32>
    %cst_4 = arith.constant 9.99999974E-6 : f32
    %12 = vector.broadcast %cst_4 : f32 to vector<8x1xf32>
    %13 = arith.addf %11, %12 : vector<8x1xf32>
    %14 = math.rsqrt %13 : vector<8x1xf32>
    %15 = vector.broadcast %14 : vector<8x1xf32> to vector<8x16xf32>
    %16 = arith.mulf %6, %15 : vector<8x16xf32>
    %c0_5 = arith.constant 0 : index
    %c0_6 = arith.constant 0 : index
    %17 = vector.load %arg2[%c0_5, %c0_6] : memref<8x16xf32, #tpu.memory_space<vmem>>, vector<8x16xf32>
    tpu.vector_store %arg2[%c0_5, %c0_6], %16 {strides = array<i32>} : memref<8x16xf32, #tpu.memory_space<vmem>>, vector<8x16xf32>,
    %c0_7 = arith.constant 0 : index
    %c0_8 = arith.constant 0 : index
    %18 = vector.load %arg3[%c0_7, %c0_8] : memref<8x1xf32, #tpu.memory_space<vmem>>, vector<8x1xf32>
    tpu.vector_store %arg3[%c0_7, %c0_8], %4 {strides = array<i32>} : memref<8x1xf32, #tpu.memory_space<vmem>>, vector<8x1xf32>,
    %19 = math.sqrt %13 : vector<8x1xf32>
    %c0_9 = arith.constant 0 : index
    %c0_10 = arith.constant 0 : index
    %20 = vector.load %arg4[%c0_9, %c0_10] : memref<8x1xf32, #tpu.memory_space<vmem>>, vector<8x1xf32>
    tpu.vector_store %arg4[%c0_9, %c0_10], %19 {strides = array<i32>} : memref<8x1xf32, #tpu.memory_space<vmem>>, vector<8x1xf32>,
    return
  }
  func.func @transform_0(%arg0: i32) -> (i32, i32) {
    %c0_i32 = arith.constant 0 : i32
    %c0_i32_0 = arith.constant 0 : i32
    return %arg0, %c0_i32 : i32, i32
  }
  func.func @transform_1(%arg0: i32) -> (i32, i32) {
    %c0_i32 = arith.constant 0 : i32
    %c0_i32_0 = arith.constant 0 : i32
    return %arg0, %c0_i32 : i32, i32
  }
  func.func @transform_2(%arg0: i32) -> (i32, i32) {
    %c0_i32 = arith.constant 0 : i32
    %c0_i32_0 = arith.constant 0 : i32
    return %arg0, %c0_i32 : i32, i32
  }
  func.func @transform_3(%arg0: i32) -> (i32, i32) {
    %c0_i32 = arith.constant 0 : i32
    %c0_i32_0 = arith.constant 0 : i32
    return %arg0, %c0_i32 : i32, i32
  }
}

</mosaic_0001>

<bundles_post_ra>
// kernel: tpu_custom_call.1
= control target key start
LH: loop header
LB: loop body
LE: loop exit
PB: predicated region body
PF: predicated region fallthrough
CT: control target
= control target key end

     0   :  { %9 = vsyncpa [#allocation3], 0  ;;  %s197_s0 = inlined_call_operand.hbm [shape: f32[8,16], index: 0, kind: input, shape index: {}]   ;;  %s198_s1 = inlined_call_operand.hbm [shape: f32[8,16], index: 1, kind: output, shape index: {0}]   ;;  %s199_s2 = inlined_call_operand.vmem [shape: f32[8,1], index: 2, kind: output, shape index: {1}]   ;;  %s200_s3 = inlined_call_operand.vmem [shape: f32[8,1], index: 3, kind: output, shape index: {2}]  }
   0x1   :  { %10 = vsyncpa [#allocation4], 0  ;;  %s16_s14 = sshll.u32 %s197_s0, 4  ;;  %s157_s15 = smov [#allocation2]   ;;  %s17_s14 = int_to_ptr.hbm [resolvable:$true] %s16_s14 }
   0x2   :  { %s18_s16 = sshll.u32 %s157_s15, 4  ;;  %s19_s16 = int_to_ptr.vmem [resolvable:$true] %s18_s16 }
   0x3   :  { %21 = dma.hbm_to_vmem [thread:$0]  %s17_s14, 128, %s19_s16, [#allocation3]  }
   0x4   :  { %153 = dma.done.wait [#allocation3], 128  }
   0x5   :  { %154 = vsyncadd [#allocation3], 4294967168  ;;  %vm27_vm0 = vcmask 130048   ;;  %v26_v0 = vld [vmem:[#allocation2] sm:$0xff]  ;;  %vm58_vm1 = vcmask 7168   ;;  %v158_v7 = vmov 15.0  }
   0x6   :  { %v28_v1 = vsel %vm27_vm0, %v26_v0, 0.0  ;;  %101 = vrcp.f32 %v158_v7  ;;  %s159_s0 = smov [#allocation5]   ;;  %s80_s21 = sshll.u32 %s198_s1, 4  ;;  %s81_s21 = int_to_ptr.hbm [resolvable:$true] %s80_s21 }
   0x7   :  { %29 = vadd.xlane.f32.xlu0 %v28_v1 }
   0xc   :  { %v102_v8 = vpop.eup %101 }
   0xd   :  { %v38_v9 = vmul.f32 15.0, %v102_v8  ;;  %vm42_vm2 = vweird.f32 %v102_v8 }
   0xf   :  { %v39_v10 = vsub.f32 1.0, %v38_v9 }
  0x11   :  { %v40_v11 = vmul.f32 %v102_v8, %v39_v10 }
  0x13   :  { %v41_v12 = vadd.f32 %v102_v8, %v40_v11 }
  0x15   :  { %v43_v13 = vsel %vm42_vm2, %v102_v8, %v41_v12 }
  0x7a   :  { %v30_v2 = vpop.xlane.xlu0 %29 }
  0x7b   :  { %v31_v3 = vmul.f32 0.0625, %v30_v2 }
  0x7d   :  { %v32_v4 = vsub.f32 %v26_v0, %v31_v3  ;;  %59 = vst.msk [vmem:[%s199_s2] sm:$0xff] %vm58_vm1, %v31_v3  ;;  %s78_s2 = sshll.u32 %s159_s0, 4  ;;  %s79_s2 = int_to_ptr.vmem [resolvable:$true] %s78_s2 }
  0x7f   :  { %v33_v5 = vmul.f32 %v32_v4, %v32_v4 }
  0x81   :  { %v34_v6 = vsel %vm27_vm0, %v33_v5, 0.0 }
  0x82   :  { %35 = vadd.xlane.f32.xlu0 %v34_v6 }
  0xf5   :  { %v36_v14 = vpop.xlane.xlu0 %35 }
  0xf6   :  { %v44_v15 = vmul.f32 %v43_v13, %v36_v14 }
  0xf8   :  { %v45_v16 = vadd.f32 1e-05, %v44_v15 }
  0xfa   :  { %103 = vrsqrt.f32 %v45_v16  ;;  %vm52_vm4 = vweird.f32 %v45_v16  ;;  %vm67_vm6 = vcmp.eq.f32.partialorder %v45_v16, inf  ;;  %v70_v26 = vand.u32 2147483648, %v45_v16 }
  0xfb   :  { %vm69_vm7 = vcmp.eq.f32.partialorder %v45_v16, 0.0 }
 0x100   :  { %v104_v17 = vpop.eup %103 }
 0x101   :  { %v47_v18 = vmul.f32 %v104_v17, %v45_v16  ;;  %vm53_vm3 = vweird.f32 %v104_v17 }
 0x102   :  { %vm54_vm5 = vmor %vm52_vm4, %vm53_vm3 }
 0x103   :  { %v48_v19 = vmul.f32 %v104_v17, %v47_v18 }
 0x105   :  { %v49_v20 = vmul.f32 0.5, %v48_v19 }
 0x107   :  { %v50_v21 = vsub.f32 1.5, %v49_v20 }
 0x109   :  { %v51_v22 = vmul.f32 %v104_v17, %v50_v21 }
 0x10b   :  { %v55_v23 = vsel %vm54_vm5, %v104_v17, %v51_v22  ;;  %v66_v24 = vmul.f32 %v51_v22, %v45_v16 }
 0x10c   :  { %v56_v25 = vmul.f32 %v55_v23, %v32_v4 }
 0x10d   :  { %v68_v27 = vsel %vm67_vm6, %v45_v16, %v66_v24 }
 0x10e   :  { %57 = vst.msk [vmem:[#allocation5] sm:$0xff] %vm27_vm0, %v56_v25  ;;  %v71_v28 = vsel %vm69_vm7, %v70_v26, %v68_v27 }
 0x10f   :  { %72 = vst.msk [vmem:[%s200_s3] sm:$0xff] %vm58_vm1, %v71_v28  ;;  %83 = dma.vmem_to_hbm [thread:$0]  %s79_s2, 128, %s81_s21, [#allocation4]  }
 0x110   :  { %155 = dma.done.wait [#allocation4], 128  }
 0x111   :  { %156 = vsyncadd [#allocation4], 4294967168 }
 0x112   :  { %96 = vsyncpa [#allocation3], 1 }
 0x113   :  { %97 = vsyncpa [#allocation4], 1 }

</bundles_post_ra>
